<compile_context>
chip_gen: v5e
topology: v5e:2x2
jax: 0.10.0
libtpu: 0.0.40
codegen_flags: <defaults>
</compile_context>

<pallas_src>
import math

import jax
import jax.numpy as jnp
from jax.experimental import pallas as pl
from jax.experimental.pallas import tpu as pltpu


N_TRACK = 10
N_WAYPOINTS = 3
IN_DIM = N_TRACK * 2 * 2          # 40
HIDDEN = 256
OUT_DIM = N_WAYPOINTS * 2         # 6

IN_PAD = 128                      # lane-dense padded input feature dim
OUT_PAD = 128                     # lane-dense padded output feature dim


def _round_up(x, m):
    return ((x + m - 1) // m) * m


def _mlp_kernel(x_ref, w1_ref, b1_ref, w2_ref, b2_ref, w3_ref, b3_ref, o_ref):
    # x_ref: (TB, IN_PAD) f32;  weights are bf16;  biases f32;  o_ref: (TB, OUT_PAD) f32
    x = x_ref[...]

    # Layer 1: Linear(40->256) + ReLU   (Dropout is identity at eval time)
    h1 = jnp.dot(x.astype(jnp.bfloat16), w1_ref[...],
                 preferred_element_type=jnp.float32) + b1_ref[...]
    h1 = jnp.maximum(h1, 0.0)

    # Layer 2: Linear(256->256) + ReLU
    h2 = jnp.dot(h1.astype(jnp.bfloat16), w2_ref[...],
                 preferred_element_type=jnp.float32) + b2_ref[...]
    h2 = jnp.maximum(h2, 0.0)

    # Layer 3: Linear(256->6), zero-padded to 128 output lanes
    out = jnp.dot(h2.astype(jnp.bfloat16), w3_ref[...],
                  preferred_element_type=jnp.float32) + b3_ref[...]
    o_ref[...] = out.astype(o_ref.dtype)


def mlp_planner_forward(track_left, track_right, params):
    """track_left/track_right: (B, n_track, 2) float32 -> (B, n_waypoints, 2)."""
    b = track_left.shape[0]
    # cat along track dim, then flatten per-batch  -> (B, 40)
    x = jnp.concatenate([track_left, track_right], axis=1).reshape(b, -1)
    x = x.astype(jnp.float32)

    w1, b1, w2, b2, w3, b3 = params

    # ---- host-side padding / dtype prep (all zero-padded, so math is unchanged) ----
    x_p = jnp.pad(x, ((0, 0), (0, IN_PAD - IN_DIM)))                      # (B, 128)
    w1_p = jnp.pad(w1, ((0, IN_PAD - IN_DIM), (0, 0))).astype(jnp.bfloat16)   # (128, 256)
    w2_b = w2.astype(jnp.bfloat16)                                        # (256, 256)
    w3_p = jnp.pad(w3, ((0, 0), (0, OUT_PAD - OUT_DIM))).astype(jnp.bfloat16)  # (256, 128)
    b1r = b1.reshape(1, -1).astype(jnp.float32)                           # (1, 256)
    b2r = b2.reshape(1, -1).astype(jnp.float32)                           # (1, 256)
    b3r = jnp.pad(b3, (0, OUT_PAD - OUT_DIM)).reshape(1, -1).astype(jnp.float32)  # (1, 128)

    # ---- batch tiling ----
    tb = 256 if b >= 256 else _round_up(b, 8)
    b_pad = _round_up(b, tb)
    if b_pad != b:
        x_p = jnp.pad(x_p, ((0, b_pad - b), (0, 0)))
    grid = (b_pad // tb,)

    flops = 2 * b_pad * (IN_PAD * HIDDEN + HIDDEN * HIDDEN + HIDDEN * OUT_PAD)
    bytes_accessed = (
        b_pad * IN_PAD * 4                       # x (f32)
        + (IN_PAD * HIDDEN + HIDDEN * HIDDEN + HIDDEN * OUT_PAD) * 2   # weights (bf16)
        + (HIDDEN + HIDDEN + OUT_PAD) * 4        # biases (f32)
        + b_pad * OUT_PAD * 4                    # out (f32)
    )

    out = pl.pallas_call(
        _mlp_kernel,
        out_shape=jax.ShapeDtypeStruct((b_pad, OUT_PAD), jnp.float32),
        grid_spec=pltpu.PrefetchScalarGridSpec(
            num_scalar_prefetch=0,
            grid=grid,
            in_specs=[
                pl.BlockSpec((tb, IN_PAD), lambda i: (i, 0)),       # x: tiled over batch
                pl.BlockSpec((IN_PAD, HIDDEN), lambda i: (0, 0)),   # w1: VMEM-resident
                pl.BlockSpec((1, HIDDEN), lambda i: (0, 0)),        # b1
                pl.BlockSpec((HIDDEN, HIDDEN), lambda i: (0, 0)),   # w2
                pl.BlockSpec((1, HIDDEN), lambda i: (0, 0)),        # b2
                pl.BlockSpec((HIDDEN, OUT_PAD), lambda i: (0, 0)),  # w3 (padded)
                pl.BlockSpec((1, OUT_PAD), lambda i: (0, 0)),       # b3 (padded)
            ],
            out_specs=pl.BlockSpec((tb, OUT_PAD), lambda i: (i, 0)),
        ),
        compiler_params=pltpu.CompilerParams(
            dimension_semantics=("parallel",),
        ),
        cost_estimate=pl.CostEstimate(
            flops=flops, transcendentals=0, bytes_accessed=bytes_accessed),
    )(x_p, w1_p, b1r, w2_b, b2r, w3_p, b3r)

    # drop batch padding and the zero output lanes, then reshape to waypoints
    return out[:b, :OUT_DIM].reshape(b, N_WAYPOINTS, 2)


def init_params(key):
    """Deterministic init matching nn.Linear's U(-1/sqrt(fan_in), 1/sqrt(fan_in))."""
    ks = jax.random.split(key, 6)

    def linear(kw, kb, fan_in, fan_out):
        bound = 1.0 / math.sqrt(fan_in)
        w = jax.random.uniform(kw, (fan_in, fan_out), jnp.float32, -bound, bound)
        bvec = jax.random.uniform(kb, (fan_out,), jnp.float32, -bound, bound)
        return w, bvec

    w1, b1 = linear(ks[0], ks[1], IN_DIM, HIDDEN)
    w2, b2 = linear(ks[2], ks[3], HIDDEN, HIDDEN)
    w3, b3 = linear(ks[4], ks[5], HIDDEN, OUT_DIM)
    return (w1, b1, w2, b2, w3, b3)


if __name__ == "__main__":
    key = jax.random.PRNGKey(0)
    k_params, k_left, k_right = jax.random.split(key, 3)

    params = init_params(k_params)

    B = 2
    track_left = jax.random.normal(k_left, (B, N_TRACK, 2), jnp.float32)
    track_right = jax.random.normal(k_right, (B, N_TRACK, 2), jnp.float32)

    waypoints = mlp_planner_forward(track_left, track_right, params)
    waypoints = jax.block_until_ready(waypoints)

    assert waypoints.shape == (B, N_WAYPOINTS, 2), waypoints.shape
    assert waypoints.dtype == jnp.float32

    w1, b1, w2, b2, w3, b3 = params
    x = jnp.concatenate([track_left, track_right], axis=1).reshape(B, -1)

    # Matched-precision reference (same bf16 matmul inputs, f32 accumulate/bias/ReLU).
    def bf16_dot(a, w):
        return jnp.dot(a.astype(jnp.bfloat16), w.astype(jnp.bfloat16),
                       preferred_element_type=jnp.float32)
    h = jnp.maximum(bf16_dot(x, w1) + b1, 0.0)
    h = jnp.maximum(bf16_dot(h, w2) + b2, 0.0)
    ref_bf16 = (bf16_dot(h, w3) + b3).reshape(B, N_WAYPOINTS, 2)
    assert jnp.allclose(waypoints, ref_bf16, atol=1e-3, rtol=1e-3), (
        jnp.max(jnp.abs(waypoints - ref_bf16)))

    # Loose sanity check against the full-f32 reference (bf16 weight rounding drift).
    hf = jnp.maximum(x @ w1 + b1, 0.0)
    hf = jnp.maximum(hf @ w2 + b2, 0.0)
    ref_f32 = (hf @ w3 + b3).reshape(B, N_WAYPOINTS, 2)
    assert jnp.allclose(waypoints, ref_f32, atol=5e-2, rtol=5e-2), (
        jnp.max(jnp.abs(waypoints - ref_f32)))

    print("KERNEL_OK")
</pallas_src>

<mosaic_0001>
module attributes {stable_mosaic.version = 11 : i64} {
  func.func @_mlp_kernel(%arg0: i32, %arg1: memref<8x128xf32, #tpu.memory_space<vmem>>, %arg2: memref<128x256xbf16, #tpu.memory_space<vmem>>, %arg3: memref<1x256xf32, #tpu.memory_space<vmem>>, %arg4: memref<256x256xbf16, #tpu.memory_space<vmem>>, %arg5: memref<1x256xf32, #tpu.memory_space<vmem>>, %arg6: memref<256x128xbf16, #tpu.memory_space<vmem>>, %arg7: memref<1x128xf32, #tpu.memory_space<vmem>>, %arg8: memref<8x128xf32, #tpu.memory_space<vmem>>) attributes {dimension_semantics = [#tpu.dimension_semantics<parallel>], iteration_bounds = array<i64: 1>, scalar_prefetch = 0 : i64, scratch_operands = 0 : i64, tpu.core_type = #tpu.core_type<tc>, window_params = [{transform_indices = @transform_0, window_bounds = array<i64: 8, 128>}, {pipeline_mode = #tpu.pipeline_mode<synchronous>, transform_indices = @transform_1, window_bounds = array<i64: 128, 256>}, {pipeline_mode = #tpu.pipeline_mode<synchronous>, transform_indices = @transform_2, window_bounds = array<i64: 1, 256>}, {pipeline_mode = #tpu.pipeline_mode<synchronous>, transform_indices = @transform_3, window_bounds = array<i64: 256, 256>}, {pipeline_mode = #tpu.pipeline_mode<synchronous>, transform_indices = @transform_4, window_bounds = array<i64: 1, 256>}, {pipeline_mode = #tpu.pipeline_mode<synchronous>, transform_indices = @transform_5, window_bounds = array<i64: 256, 128>}, {pipeline_mode = #tpu.pipeline_mode<synchronous>, transform_indices = @transform_6, window_bounds = array<i64: 1, 128>}, {transform_indices = @transform_7, window_bounds = array<i64: 8, 128>}]} {
    %c0 = arith.constant 0 : index
    %c0_0 = arith.constant 0 : index
    %0 = vector.load %arg1[%c0, %c0_0] : memref<8x128xf32, #tpu.memory_space<vmem>>, vector<8x128xf32>
    %1 = arith.truncf %0 : vector<8x128xf32> to vector<8x128xbf16>
    %c0_1 = arith.constant 0 : index
    %c0_2 = arith.constant 0 : index
    %2 = vector.load %arg2[%c0_1, %c0_2] : memref<128x256xbf16, #tpu.memory_space<vmem>>, vector<128x256xbf16>
    %cst = arith.constant dense<0.000000e+00> : vector<8x256xf32>
    %3 = tpu.matmul %1, %2, %cst {dimension_numbers = #tpu.dot_dimension_numbers<[1], [0], [0], [1], [0, 0, 1, 1], [], []>} : vector<8x128xbf16>, vector<128x256xbf16>, vector<8x256xf32> -> vector<8x256xf32>
    %c0_3 = arith.constant 0 : index
    %c0_4 = arith.constant 0 : index
    %4 = vector.load %arg3[%c0_3, %c0_4] : memref<1x256xf32, #tpu.memory_space<vmem>>, vector<1x256xf32>
    %5 = vector.broadcast %4 : vector<1x256xf32> to vector<8x256xf32>
    %6 = arith.addf %3, %5 : vector<8x256xf32>
    %cst_5 = arith.constant 0.000000e+00 : f32
    %7 = vector.broadcast %cst_5 : f32 to vector<8x256xf32>
    %8 = arith.maximumf %6, %7 : vector<8x256xf32>
    %9 = arith.truncf %8 : vector<8x256xf32> to vector<8x256xbf16>
    %c0_6 = arith.constant 0 : index
    %c0_7 = arith.constant 0 : index
    %10 = vector.load %arg4[%c0_6, %c0_7] : memref<256x256xbf16, #tpu.memory_space<vmem>>, vector<256x256xbf16>
    %cst_8 = arith.constant dense<0.000000e+00> : vector<8x256xf32>
    %11 = tpu.matmul %9, %10, %cst_8 {dimension_numbers = #tpu.dot_dimension_numbers<[1], [0], [0], [1], [0, 0, 1, 1], [], []>} : vector<8x256xbf16>, vector<256x256xbf16>, vector<8x256xf32> -> vector<8x256xf32>
    %c0_9 = arith.constant 0 : index
    %c0_10 = arith.constant 0 : index
    %12 = vector.load %arg5[%c0_9, %c0_10] : memref<1x256xf32, #tpu.memory_space<vmem>>, vector<1x256xf32>
    %13 = vector.broadcast %12 : vector<1x256xf32> to vector<8x256xf32>
    %14 = arith.addf %11, %13 : vector<8x256xf32>
    %cst_11 = arith.constant 0.000000e+00 : f32
    %15 = vector.broadcast %cst_11 : f32 to vector<8x256xf32>
    %16 = arith.maximumf %14, %15 : vector<8x256xf32>
    %17 = arith.truncf %16 : vector<8x256xf32> to vector<8x256xbf16>
    %c0_12 = arith.constant 0 : index
    %c0_13 = arith.constant 0 : index
    %18 = vector.load %arg6[%c0_12, %c0_13] : memref<256x128xbf16, #tpu.memory_space<vmem>>, vector<256x128xbf16>
    %cst_14 = arith.constant dense<0.000000e+00> : vector<8x128xf32>
    %19 = tpu.matmul %17, %18, %cst_14 {dimension_numbers = #tpu.dot_dimension_numbers<[1], [0], [0], [1], [0, 0, 1, 1], [], []>} : vector<8x256xbf16>, vector<256x128xbf16>, vector<8x128xf32> -> vector<8x128xf32>
    %c0_15 = arith.constant 0 : index
    %c0_16 = arith.constant 0 : index
    %20 = vector.load %arg7[%c0_15, %c0_16] : memref<1x128xf32, #tpu.memory_space<vmem>>, vector<1x128xf32>
    %21 = vector.broadcast %20 : vector<1x128xf32> to vector<8x128xf32>
    %22 = arith.addf %19, %21 : vector<8x128xf32>
    %c0_17 = arith.constant 0 : index
    %c0_18 = arith.constant 0 : index
    %23 = vector.load %arg8[%c0_17, %c0_18] : memref<8x128xf32, #tpu.memory_space<vmem>>, vector<8x128xf32>
    tpu.vector_store %arg8[%c0_17, %c0_18], %22 {strides = array<i32>} : memref<8x128xf32, #tpu.memory_space<vmem>>, vector<8x128xf32>,
    return
  }
  func.func @transform_0(%arg0: i32) -> (i32, i32) {
    %c0_i32 = arith.constant 0 : i32
    %c0_i32_0 = arith.constant 0 : i32
    return %arg0, %c0_i32 : i32, i32
  }
  func.func @transform_1(%arg0: i32) -> (i32, i32) {
    %c0_i32 = arith.constant 0 : i32
    %c0_i32_0 = arith.constant 0 : i32
    %c0_i32_1 = arith.constant 0 : i32
    return %c0_i32, %c0_i32_0 : i32, i32
  }
  func.func @transform_2(%arg0: i32) -> (i32, i32) {
    %c0_i32 = arith.constant 0 : i32
    %c0_i32_0 = arith.constant 0 : i32
    %c0_i32_1 = arith.constant 0 : i32
    return %c0_i32, %c0_i32_0 : i32, i32
  }
  func.func @transform_3(%arg0: i32) -> (i32, i32) {
    %c0_i32 = arith.constant 0 : i32
    %c0_i32_0 = arith.constant 0 : i32
    %c0_i32_1 = arith.constant 0 : i32
    return %c0_i32, %c0_i32_0 : i32, i32
  }
  func.func @transform_4(%arg0: i32) -> (i32, i32) {
    %c0_i32 = arith.constant 0 : i32
    %c0_i32_0 = arith.constant 0 : i32
    %c0_i32_1 = arith.constant 0 : i32
    return %c0_i32, %c0_i32_0 : i32, i32
  }
  func.func @transform_5(%arg0: i32) -> (i32, i32) {
    %c0_i32 = arith.constant 0 : i32
    %c0_i32_0 = arith.constant 0 : i32
    %c0_i32_1 = arith.constant 0 : i32
    return %c0_i32, %c0_i32_0 : i32, i32
  }
  func.func @transform_6(%arg0: i32) -> (i32, i32) {
    %c0_i32 = arith.constant 0 : i32
    %c0_i32_0 = arith.constant 0 : i32
    %c0_i32_1 = arith.constant 0 : i32
    return %c0_i32, %c0_i32_0 : i32, i32
  }
  func.func @transform_7(%arg0: i32) -> (i32, i32) {
    %c0_i32 = arith.constant 0 : i32
    %c0_i32_0 = arith.constant 0 : i32
    return %arg0, %c0_i32 : i32, i32
  }
}

</mosaic_0001>

<bundles_post_ra>
// kernel: tpu_custom_call.1
= control target key start
LH: loop header
LB: loop body
LE: loop exit
PB: predicated region body
PF: predicated region fallthrough
CT: control target
= control target key end

     0   :  { %12 = vsyncpa [#allocation3], 0  ;;  %s1224_s0 = inlined_call_operand.hbm [shape: f32[8,128], index: 0, kind: input, shape index: {}]   ;;  %s1225_s1 = inlined_call_operand.hbm [shape: bf16[128,256], index: 1, kind: input, shape index: {}]   ;;  %s1226_s2 = inlined_call_operand.hbm [shape: f32[1,256], index: 2, kind: input, shape index: {}]   ;;  %s1227_s3 = inlined_call_operand.hbm [shape: bf16[256,256], index: 3, kind: input, shape index: {}]   ;;  %s1228_s4 = inlined_call_operand.vmem [shape: f32[1,256], index: 4, kind: input, shape index: {}]   ;;  %s1229_s5 = inlined_call_operand.hbm [shape: bf16[256,128], index: 5, kind: input, shape index: {}]   ;;  %s1230_s6 = inlined_call_operand.vmem [shape: f32[1,128], index: 6, kind: input, shape index: {}]   ;;  %s1231_s7 = inlined_call_operand.hbm [shape: f32[8,128], index: 7, kind: output, shape index: {}]  }
   0x1   :  { %13 = vsyncpa [#allocation6], 0 }
   0x2   :  { %14 = vsyncpa [#allocation9], 0  ;;  %s31_s26 = sshll.u32 %s1225_s1, 4  ;;  %s32_s26 = int_to_ptr.hbm [resolvable:$true] %s31_s26 }
   0x3   :  { %15 = vsyncpa [#allocation4], 0  ;;  %s1150_s27 = smov [#allocation5]   ;;  %s55_s8 = sshll.u32 %s1227_s3, 4  ;;  %s56_s8 = int_to_ptr.hbm [resolvable:$true] %s55_s8 }
   0x4   :  { %s33_s28 = sshll.u32 %s1150_s27, 4  ;;  %s1151_s9 = smov 128   ;;  %s34_s28 = int_to_ptr.vmem [resolvable:$true] %s33_s28 }
   0x5   :  { %s1152_s10 = smov 8   ;;  %s1153_s11 = smov [#allocation8]  }
   0x6   :  { %39 = dma.hbm_to_vmem [thread:$0]  %s32_s26, 2048, %s34_s28, [#allocation6], %s1151_s9, %s1151_s9, %s1152_s10  }
   0x7   :  { %s57_s12 = sshll.u32 %s1153_s11, 4  ;;  %s21_s15 = sshll.u32 %s1224_s0, 4  ;;  %s58_s12 = int_to_ptr.vmem [resolvable:$true] %s57_s12  ;;  %s22_s15 = int_to_ptr.hbm [resolvable:$true] %s21_s15 }
   0x8   :  { %63 = dma.hbm_to_vmem [thread:$0]  %s56_s8, 4096, %s58_s12, [#allocation9], %s1151_s9, %s1151_s9, %s1152_s10  }
   0x9   :  { %s45_s17 = sshll.u32 %s1226_s2, 4  ;;  %s1154_s18 = smov [#allocation2]   ;;  %s46_s17 = int_to_ptr.hbm [resolvable:$true] %s45_s17 }
   0xa   :  { %s23_s19 = sshll.u32 %s1154_s18, 4  ;;  %s1155_s3 = smov [#allocation7]   ;;  %s24_s19 = int_to_ptr.vmem [resolvable:$true] %s23_s19 }
   0xb   :  { %26 = dma.hbm_to_vmem [thread:$0]  %s22_s15, 128, %s24_s19, [#allocation3]  }
   0xc   :  { %s47_s20 = sshll.u32 %s1155_s3, 4  ;;  %s70_s23 = sshll.u32 %s1229_s5, 4  ;;  %s48_s20 = int_to_ptr.vmem [resolvable:$true] %s47_s20  ;;  %s71_s23 = int_to_ptr.hbm [resolvable:$true] %s70_s23 }
   0xd   :  { %50 = dma.hbm_to_vmem [thread:$0]  %s46_s17, 32, %s48_s20, [#allocation6]  }
   0xe   :  { %s1156_s0 = smov [#allocation10]   ;;  %s1157_s25 = smov 64  }
   0xf   :  { %s72_s24 = sshll.u32 %s1156_s0, 4  ;;  %s1158_s26 = smov 4   ;;  %s73_s24 = int_to_ptr.vmem [resolvable:$true] %s72_s24 }
  0x10   :  { %78 = dma.hbm_to_vmem [thread:$0]  %s71_s23, 2048, %s73_s24, [#allocation9], %s1157_s25, %s1157_s25, %s1158_s26  }
  0x11   :  { %1142 = dma.done.wait [#allocation3], 128  }
  0x12   :  { %1143 = vsyncadd [#allocation3], 4294967168 }
  0x13   :  { %1144 = dma.done.wait [#allocation6], 2080  }
  0x14   :  { %1145 = vsyncadd [#allocation6], 4294965216 }
  0x15   :  { %1146 = dma.done.wait [#allocation9], 6144  }
  0x16   :  { %1147 = vsyncadd [#allocation9], 4294961152  ;;  %v725_v0 = vld [vmem:[#allocation5 + $0x70] sm:$0xf]  ;;  %v938_v1 = vld [vmem:[#allocation5 + $0x74] sm:$0xf0] }
  0x17   :  { %v937_v2 = vld [vmem:[#allocation5 + $0x74] sm:$0xf]  ;;  %v726_v3 = vor.u32 %v938_v1, %v725_v0  ;;  %v727_v4 = vld [vmem:[#allocation5 + $0x78] sm:$0xf0]  ;;  %v717_v5 = vld [vmem:[#allocation5 + $0x60] sm:$0xf] }
  0x18   :  { %v936_v6 = vld [vmem:[#allocation5 + $0x64] sm:$0xf0]  ;;  %v730_v7 = vor.u32 %v937_v2, %v727_v4  ;;  %v935_v8 = vld [vmem:[#allocation5 + $0x64] sm:$0xf]  ;;  %v719_v9 = vld [vmem:[#allocation5 + $0x68] sm:$0xf0] }
  0x19   :  { %205 = vmatpush.bf16.msra.mxu0 %v726_v3  ;;  %v718_v10 = vor.u32 %v936_v6, %v717_v5  ;;  %v722_v11 = vor.u32 %v935_v8, %v719_v9  ;;  %v709_v12 = vld [vmem:[#allocation5 + $0x50] sm:$0xf]  ;;  %v934_v13 = vld [vmem:[#allocation5 + $0x54] sm:$0xf0]  ;;  %v933_v14 = vld [vmem:[#allocation5 + $0x54] sm:$0xf] }
  0x1a   :  { %218 = vmatpush.bf16.msra.mxu1 %v730_v7  ;;  %v711_v15 = vld [vmem:[#allocation5 + $0x58] sm:$0xf0]  ;;  %v710_v16 = vor.u32 %v934_v13, %v709_v12  ;;  %v701_v18 = vld [vmem:[#allocation5 + $0x40] sm:$0xf]  ;;  %v932_v19 = vld [vmem:[#allocation5 + $0x44] sm:$0xf0] }
  0x1b   :  { %v714_v17 = vor.u32 %v933_v14, %v711_v15  ;;  %v931_v20 = vld [vmem:[#allocation5 + $0x44] sm:$0xf]  ;;  %v703_v21 = vld [vmem:[#allocation5 + $0x48] sm:$0xf0]  ;;  %v702_v22 = vor.u32 %v932_v19, %v701_v18  ;;  %v789_v23 = vld [vmem:[#allocation8 + $0x70] sm:$0xf] }
  0x1c   :  { %v954_v24 = vld [vmem:[#allocation8 + $0x74] sm:$0xf0]  ;;  %v853_v25 = vld [vmem:[#allocation8 + $0xf0] sm:$0xf]  ;;  %v706_v26 = vor.u32 %v931_v20, %v703_v21  ;;  %v781_v34 = vld [vmem:[#allocation8 + $0x60] sm:$0xf] }
  0x1d   :  { %206 = vmatpush.bf16.msra.mxu0 %v718_v10  ;;  %v693_v27 = vld [vmem:[#allocation5 + $0x30] sm:$0xf]  ;;  %v930_v28 = vld [vmem:[#allocation5 + $0x34] sm:$0xf0]  ;;  %v790_v29 = vor.u32 %v954_v24, %v789_v23  ;;  %v929_v31 = vld [vmem:[#allocation5 + $0x34] sm:$0xf] }
  0x1e   :  { %219 = vmatpush.bf16.msra.mxu1 %v722_v11  ;;  %v970_v30 = vld [vmem:[#allocation8 + $0xf4] sm:$0xf0]  ;;  %v952_v35 = vld [vmem:[#allocation8 + $0x64] sm:$0xf0]  ;;  %v845_v36 = vld [vmem:[#allocation8 + $0xe0] sm:$0xf]  ;;  %v694_v38 = vor.u32 %v930_v28, %v693_v27 }
  0x1f   :  { %v695_v32 = vld [vmem:[#allocation5 + $0x38] sm:$0xf0]  ;;  %v854_v33 = vor.u32 %v970_v30, %v853_v25  ;;  %433 = vmatpush.bf16.msra.mxu2 %v790_v29  ;;  %v968_v37 = vld [vmem:[#allocation8 + $0xe4] sm:$0xf0]  ;;  %v685_v39 = vld [vmem:[#allocation5 + $0x20] sm:$0xf]  ;;  %v782_v41 = vor.u32 %v952_v35, %v781_v34 }
  0x20   :  { %v928_v40 = vld [vmem:[#allocation5 + $0x24] sm:$0xf0]  ;;  %v846_v42 = vor.u32 %v968_v37, %v845_v36  ;;  %v698_v43 = vor.u32 %v929_v31, %v695_v32  ;;  %v927_v44 = vld [vmem:[#allocation5 + $0x24] sm:$0xf]  ;;  %v773_v45 = vld [vmem:[#allocation8 + $0x50] sm:$0xf] }
  0x21   :  { %207 = vmatpush.bf16.msra.mxu0 %v710_v16  ;;  %446 = vmatpush.bf16.msra.mxu3 %v854_v33  ;;  %v950_v46 = vld [vmem:[#allocation8 + $0x54] sm:$0xf0]  ;;  %v687_v47 = vld [vmem:[#allocation5 + $0x28] sm:$0xf0]  ;;  %v837_v48 = vld [vmem:[#allocation8 + $0xd0] sm:$0xf]  ;;  %v686_v51 = vor.u32 %v928_v40, %v685_v39 }
  0x22   :  { %220 = vmatpush.bf16.msra.mxu1 %v714_v17  ;;  %v966_v49 = vld [vmem:[#allocation8 + $0xd4] sm:$0xf0]  ;;  %v774_v50 = vor.u32 %v950_v46, %v773_v45  ;;  %v677_v52 = vld [vmem:[#allocation5 + $0x10] sm:$0xf]  ;;  %v765_v54 = vld [vmem:[#allocation8 + $0x40] sm:$0xf]  ;;  %v690_v56 = vor.u32 %v927_v44, %v687_v47 }
  0x23   :  { %434 = vmatpush.bf16.msra.mxu2 %v782_v41  ;;  %v838_v53 = vor.u32 %v966_v49, %v837_v48  ;;  %v948_v55 = vld [vmem:[#allocation8 + $0x44] sm:$0xf0]  ;;  %v926_v57 = vld [vmem:[#allocation5 + $0x14] sm:$0xf0]  ;;  %v829_v58 = vld [vmem:[#allocation8 + $0xc0] sm:$0xf] }
  0x24   :  { %v964_v59 = vld [vmem:[#allocation8 + $0xc4] sm:$0xf0]  ;;  %v925_v60 = vld [vmem:[#allocation5 + $0x14] sm:$0xf]  ;;  %v679_v61 = vld [vmem:[#allocation5 + $0x18] sm:$0xf0]  ;;  %v766_v63 = vor.u32 %v948_v55, %v765_v54  ;;  %v678_v0 = vor.u32 %v926_v57, %v677_v52 }
  0x25   :  { %208 = vmatpush.bf16.msra.mxu0 %v702_v22  ;;  %447 = vmatpush.bf16.msra.mxu3 %v846_v42  ;;  %v669_v62 = vld [vmem:[#allocation5] sm:$0xf]  ;;  %v924_v1 = vld [vmem:[#allocation5 + $0x4] sm:$0xf0]  ;;  %v830_v2 = vor.u32 %v964_v59, %v829_v58  ;;  %v757_v3 = vld [vmem:[#allocation8 + $0x30] sm:$0xf]  ;;  %v682_v5 = vor.u32 %v925_v60, %v679_v61 }
  0x26   :  { %221 = vmatpush.bf16.msra.mxu1 %v706_v26  ;;  %v946_v4 = vld [vmem:[#allocation8 + $0x34] sm:$0xf0]  ;;  %v923_v6 = vld [vmem:[#allocation5 + $0x4] sm:$0xf]  ;;  %v821_v7 = vld [vmem:[#allocation8 + $0xb0] sm:$0xf]  ;;  %v670_v16 = vor.u32 %v924_v1, %v669_v62 }
  0x27   :  { %435 = vmatpush.bf16.msra.mxu2 %v774_v50  ;;  %v962_v8 = vld [vmem:[#allocation8 + $0xb4] sm:$0xf0]  ;;  %v671_v9 = vld [vmem:[#allocation5 + $0x8] sm:$0xf0]  ;;  %v953_v10 = vld [vmem:[#allocation8 + $0x74] sm:$0xf]  ;;  %v758_v15 = vor.u32 %v946_v4, %v757_v3 }
  0x28   :  { %v791_v11 = vld [vmem:[#allocation8 + $0x78] sm:$0xf0]  ;;  %v969_v13 = vld [vmem:[#allocation8 + $0xf4] sm:$0xf]  ;;  %v822_v17 = vor.u32 %v962_v8, %v821_v7  ;;  %v749_v18 = vld [vmem:[#allocation8 + $0x20] sm:$0xf]  ;;  %v674_v20 = vor.u32 %v923_v6, %v671_v9 }
  0x29   :  { %209 = vmatpush.bf16.msra.mxu0 %v694_v38  ;;  %448 = vmatpush.bf16.msra.mxu3 %v838_v53  ;;  %v101_v12 = vld [vmem:[#allocation2] sm:$0xff]  ;;  %v944_v19 = vld [vmem:[#allocation8 + $0x24] sm:$0xf0]  ;;  %v794_v21 = vor.u32 %v953_v10, %v791_v11  ;;  %v813_v22 = vld [vmem:[#allocation8 + $0xa0] sm:$0xf]  ;;  %s1159_s28 = smov [#allocation11]  }
  0x2a   :  { %222 = vmatpush.bf16.msra.mxu1 %v698_v43  ;;  %v855_v14 = vld [vmem:[#allocation8 + $0xf8] sm:$0xf0]  ;;  %v960_v23 = vld [vmem:[#allocation8 + $0xa4] sm:$0xf0]  ;;  %v951_v25 = vld [vmem:[#allocation8 + $0x64] sm:$0xf]  ;;  %v102_v27 = vpack.c.bf16 %v101_v12, %v101_v12  ;;  %v750_v30 = vor.u32 %v944_v19, %v749_v18 }
  0x2b   :  { %436 = vmatpush.bf16.msra.mxu2 %v766_v63  ;;  %v858_v24 = vor.u32 %v969_v13, %v855_v14  ;;  %v783_v26 = vld [vmem:[#allocation8 + $0x68] sm:$0xf0]  ;;  %v967_v28 = vld [vmem:[#allocation8 + $0xe4] sm:$0xf]  ;;  %v814_v31 = vor.u32 %v960_v23, %v813_v22  ;;  %v949_v34 = vld [vmem:[#allocation8 + $0x54] sm:$0xf] }
  0x2c   :  { %v847_v29 = vld [vmem:[#allocation8 + $0xe8] sm:$0xf0]  ;;  %v786_v32 = vor.u32 %v951_v25, %v783_v26  ;;  %v775_v35 = vld [vmem:[#allocation8 + $0x58] sm:$0xf0]  ;;  %v965_v36 = vld [vmem:[#allocation8 + $0xd4] sm:$0xf] }
  0x2d   :  { %210 = vmatpush.bf16.msra.mxu0 %v686_v51  ;;  %449 = vmatpush.bf16.msra.mxu3 %v830_v2  ;;  %v850_v33 = vor.u32 %v967_v28, %v847_v29  ;;  %v839_v37 = vld [vmem:[#allocation8 + $0xd8] sm:$0xf0]  ;;  %v778_v38 = vor.u32 %v949_v34, %v775_v35  ;;  %v947_v40 = vld [vmem:[#allocation8 + $0x44] sm:$0xf]  ;;  %v767_v41 = vld [vmem:[#allocation8 + $0x48] sm:$0xf0] }
  0x2e   :  { %223 = vmatpush.bf16.msra.mxu1 %v690_v56  ;;  %v842_v39 = vor.u32 %v965_v36, %v839_v37  ;;  %v963_v42 = vld [vmem:[#allocation8 + $0xc4] sm:$0xf]  ;;  %v831_v43 = vld [vmem:[#allocation8 + $0xc8] sm:$0xf0]  ;;  %v770_v44 = vor.u32 %v947_v40, %v767_v41  ;;  %v945_v46 = vld [vmem:[#allocation8 + $0x34] sm:$0xf] }
  0x2f   :  { %437 = vmatpush.bf16.msra.mxu2 %v758_v15  ;;  %v834_v45 = vor.u32 %v963_v42, %v831_v43  ;;  %v759_v47 = vld [vmem:[#allocation8 + $0x38] sm:$0xf0]  ;;  %v961_v48 = vld [vmem:[#allocation8 + $0xb4] sm:$0xf]  ;;  %v943_v52 = vld [vmem:[#allocation8 + $0x24] sm:$0xf] }
  0x30   :  { %v823_v49 = vld [vmem:[#allocation8 + $0xb8] sm:$0xf0]  ;;  %v762_v50 = vor.u32 %v945_v46, %v759_v47  ;;  %v751_v53 = vld [vmem:[#allocation8 + $0x28] sm:$0xf0]  ;;  %v959_v54 = vld [vmem:[#allocation8 + $0xa4] sm:$0xf] }
  0x31   :  { %211 = vmatpush.bf16.msra.mxu0 %v678_v0  ;;  %450 = vmatpush.bf16.msra.mxu3 %v822_v17  ;;  %v826_v51 = vor.u32 %v961_v48, %v823_v49  ;;  %v815_v55 = vld [vmem:[#allocation8 + $0xa8] sm:$0xf0]  ;;  %v754_v56 = vor.u32 %v943_v52, %v751_v53  ;;  %v741_v58 = vld [vmem:[#allocation8 + $0x10] sm:$0xf]  ;;  %v942_v59 = vld [vmem:[#allocation8 + $0x14] sm:$0xf0] }
  0x32   :  { %224 = vmatpush.bf16.msra.mxu1 %v682_v5  ;;  %v818_v57 = vor.u32 %v959_v54, %v815_v55  ;;  %v805_v60 = vld [vmem:[#allocation8 + $0x90] sm:$0xf]  ;;  %v742_v61 = vor.u32 %v942_v59, %v741_v58  ;;  %v958_v62 = vld [vmem:[#allocation8 + $0x94] sm:$0xf0]  ;;  %v941_v63 = vld [vmem:[#allocation8 + $0x14] sm:$0xf] }
  0x33   :  { %438 = vmatpush.bf16.msra.mxu2 %v750_v30  ;;  %v743_v0 = vld [vmem:[#allocation8 + $0x18] sm:$0xf0]  ;;  %v806_v1 = vor.u32 %v958_v62, %v805_v60  ;;  %v957_v3 = vld [vmem:[#allocation8 + $0x94] sm:$0xf]  ;;  %v733_v6 = vld [vmem:[#allocation8] sm:$0xf] }
  0x34   :  { %v746_v2 = vor.u32 %v941_v63, %v743_v0  ;;  %v807_v4 = vld [vmem:[#allocation8 + $0x98] sm:$0xf0]  ;;  %v940_v7 = vld [vmem:[#allocation8 + $0x4] sm:$0xf0]  ;;  %v797_v8 = vld [vmem:[#allocation8 + $0x80] sm:$0xf] }
  0x35   :  { %212 = vmatpush.bf16.msra.mxu0 %v670_v16  ;;  %451 = vmatpush.bf16.msra.mxu3 %v814_v31  ;;  %v810_v5 = vor.u32 %v957_v3, %v807_v4  ;;  %v734_v9 = vor.u32 %v940_v7, %v733_v6  ;;  %v956_v10 = vld [vmem:[#allocation8 + $0x84] sm:$0xf0]  ;;  %v939_v11 = vld [vmem:[#allocation8 + $0x4] sm:$0xf]  ;;  %v735_v12 = vld [vmem:[#allocation8 + $0x8] sm:$0xf0] }
  0x36   :  { %225 = vmatpush.bf16.msra.mxu1 %v674_v20  ;;  %v798_v13 = vor.u32 %v956_v10, %v797_v8  ;;  %v738_v14 = vor.u32 %v939_v11, %v735_v12  ;;  %v955_v15 = vld [vmem:[#allocation8 + $0x84] sm:$0xf]  ;;  %v799_v16 = vld [vmem:[#allocation8 + $0x88] sm:$0xf0]  ;;  %v986_v18 = vld [vmem:[#allocation10 + $0x78] sm:$0xff]  ;;  %s653_s29 = sshll.u32 %s1159_s28, 4  ;;  %s654_s29 = int_to_ptr.vmem [resolvable:$true] %s653_s29 }
  0x37   :  { %439 = vmatpush.bf16.msra.mxu2 %v742_v61  ;;  %v802_v17 = vor.u32 %v955_v15, %v799_v16  ;;  %v978_v19 = vld [vmem:[#allocation10 + $0x38] sm:$0xff]  ;;  %v985_v20 = vld [vmem:[#allocation10 + $0x70] sm:$0xff]  ;;  %v984_v22 = vld [vmem:[#allocation10 + $0x68] sm:$0xff]  ;;  %s655_s9 = sshll.u32 %s1231_s7, 4  ;;  %s656_s9 = int_to_ptr.hbm [resolvable:$true] %s655_s9 }
  0x38   :  { %213 = vmatmul.bf16.vlgmr.msra.gmra.mxu0 %v102_v27  ;;  %v976_v23 = vld [vmem:[#allocation10 + $0x28] sm:$0xff]  ;;  %v975_v25 = vld [vmem:[#allocation10 + $0x20] sm:$0xff]  ;;  %v982_v26 = vld [vmem:[#allocation10 + $0x58] sm:$0xff] }
  0x39   :  { %459 = vmatpush.bf16.msrb.mxu0 %v794_v21  ;;  %226 = vmatmul.bf16.vlgmr.msra.gmra.mxu1 %v102_v27  ;;  %v977_v21 = vld [vmem:[#allocation10 + $0x30] sm:$0xff]  ;;  %v119_v27 = vld [vmem:[#allocation7] sm:$0x3]  ;;  %v980_v42 = vld [vmem:[#allocation10 + $0x48] sm:$0xff] }
  0x3a   :  { %472 = vmatpush.bf16.msrb.mxu1 %v858_v24  ;;  %452 = vmatpush.bf16.msra.mxu3 %v806_v1  ;;  %v983_v24 = vld [vmem:[#allocation10 + $0x60] sm:$0xff]  ;;  %v981_v28 = vld [vmem:[#allocation10 + $0x50] sm:$0xff]  ;;  %v121_v29 = vperm.slane %v119_v27, 0  ;;  %v122_v30 = vperm.slane %v119_v27, 1  ;;  %v974_v41 = vld [vmem:[#allocation10 + $0x18] sm:$0xff] }
  0x3b   :  { %440 = vmatpush.bf16.msra.mxu2 %v734_v9  ;;  %v973_v43 = vld [vmem:[#allocation10 + $0x10] sm:$0xff]  ;;  %v971_v46 = vld [vmem:[#allocation10] sm:$0xff] }
  0x3c   :  { %v267_v47 = vld [vmem:[%s1228_s4] sm:$0x3] }
  0x3d   :  { %460 = vmatpush.bf16.msrb.mxu0 %v786_v32  ;;  %v270_v48 = vperm.slane %v267_v47, 1  ;;  %v269_v53 = vperm.slane %v267_v47, 0  ;;  %v997_v3 = vld [vmem:[%s1230_s6] ss:$0 sm:$0xff] }
  0x3e   :  { %473 = vmatpush.bf16.msrb.mxu1 %v850_v33  ;;  %453 = vmatpush.bf16.msra.mxu3 %v798_v13 }
  0x3f   :  { %621 = vmatpush.bf16.msrb.mxu2 %v978_v19 }
  0x41   :  { %461 = vmatpush.bf16.msrb.mxu0 %v778_v38 }
  0x42   :  { %474 = vmatpush.bf16.msrb.mxu1 %v842_v39  ;;  %634 = vmatpush.bf16.msrb.mxu3 %v986_v18 }
  0x43   :  { %622 = vmatpush.bf16.msrb.mxu2 %v977_v21 }
  0x45   :  { %462 = vmatpush.bf16.msrb.mxu0 %v770_v44  ;;  %v979_v44 = vld [vmem:[#allocation10 + $0x40] sm:$0xff] }
  0x46   :  { %475 = vmatpush.bf16.msrb.mxu1 %v834_v45  ;;  %635 = vmatpush.bf16.msrb.mxu3 %v985_v20  ;;  %v972_v45 = vld [vmem:[#allocation10 + $0x8] sm:$0xff] }
  0x47   :  { %623 = vmatpush.bf16.msrb.mxu2 %v976_v23 }
  0x49   :  { %463 = vmatpush.bf16.msrb.mxu0 %v762_v50 }
  0x4a   :  { %476 = vmatpush.bf16.msrb.mxu1 %v826_v51  ;;  %636 = vmatpush.bf16.msrb.mxu3 %v984_v22 }
  0x4b   :  { %624 = vmatpush.bf16.msrb.mxu2 %v975_v25 }
  0x4d   :  { %464 = vmatpush.bf16.msrb.mxu0 %v754_v56 }
  0x4e   :  { %477 = vmatpush.bf16.msrb.mxu1 %v818_v57  ;;  %637 = vmatpush.bf16.msrb.mxu3 %v983_v24 }
  0x4f   :  { %625 = vmatpush.bf16.msrb.mxu2 %v974_v41 }
  0x51   :  { %465 = vmatpush.bf16.msrb.mxu0 %v746_v2 }
  0x52   :  { %478 = vmatpush.bf16.msrb.mxu1 %v810_v5  ;;  %638 = vmatpush.bf16.msrb.mxu3 %v982_v26 }
  0x53   :  { %626 = vmatpush.bf16.msrb.mxu2 %v973_v43 }
  0x55   :  { %466 = vmatpush.bf16.msrb.mxu0 %v738_v14 }
  0x56   :  { %479 = vmatpush.bf16.msrb.mxu1 %v802_v17  ;;  %639 = vmatpush.bf16.msrb.mxu3 %v981_v28 }
  0x57   :  { %627 = vmatpush.bf16.msrb.mxu2 %v972_v45 }
  0x5a   :  { %640 = vmatpush.bf16.msrb.mxu3 %v980_v42 }
  0x5b   :  { %628 = vmatpush.bf16.msrb.mxu2 %v971_v46 }
  0x5e   :  { %641 = vmatpush.bf16.msrb.mxu3 %v979_v44 }
  0xb5   :  { %v214_v31 = vpop.f32.mrf.mxu0 }
  0xb6   :  { %v215_v32 = vadd.f32 %v214_v31, %v121_v29  ;;  %v227_v33 = vpop.f32.mrf.mxu1 }
  0xb7   :  { %v228_v34 = vadd.f32 %v227_v33, %v122_v30 }
  0xb8   :  { %v231_v35 = vmax.f32 %v215_v32, 0.0 }
  0xb9   :  { %v232_v36 = vmax.f32 %v228_v34, 0.0 }
  0xba   :  { %v233_v37 = vpack.c.bf16 %v231_v35, %v231_v35 }
  0xbb   :  { %v234_v38 = vpack.c.bf16 %v232_v36, %v232_v36 }
  0xbc   :  { %441 = vmatmul.bf16.vlgmr.msra.gmra.mxu2 %v233_v37  ;;  %467 = vmatmul.bf16.vlgmr.msrb.gmra.mxu0 %v233_v37 }
  0xbd   :  { %454 = vmatmul.bf16.vlgmr.msra.gmra.mxu3 %v234_v38  ;;  %480 = vmatmul.bf16.vlgmr.msrb.gmra.mxu1 %v234_v38  ;;  %v216_v39 = vpop.f32.mrf.mxu0 }
  0xbe   :  { %v229_v40 = vpop.f32.mrf.mxu1 }
 0x139   :  { %v468_v49 = vpop.f32.mrf.mxu0 }
 0x13a   :  { %v469_v50 = vadd.f32 %v468_v49, %v270_v48  ;;  %v481_v51 = vpop.f32.mrf.mxu1 }
 0x13c   :  { %v482_v52 = vadd.f32 %v481_v51, %v469_v50 }
 0x13e   :  { %v486_v54 = vmax.f32 %v482_v52, 0.0 }
 0x13f   :  { %v442_v55 = vpop.f32.mrf.mxu2 }
 0x140   :  { %v488_v56 = vpack.c.bf16 %v486_v54, %v486_v54  ;;  %v443_v57 = vadd.f32 %v442_v55, %v269_v53  ;;  %v455_v58 = vpop.f32.mrf.mxu3 }
 0x141   :  { %v470_v59 = vpop.f32.mrf.mxu0 }
 0x142   :  { %v456_v60 = vadd.f32 %v455_v58, %v443_v57  ;;  %v483_v61 = vpop.f32.mrf.mxu1  ;;  %642 = vmatmul.bf16.vlgmr.msrb.gmra.mxu3 %v488_v56 }
 0x144   :  { %v485_v62 = vmax.f32 %v456_v60, 0.0 }
 0x146   :  { %v487_v63 = vpack.c.bf16 %v485_v62, %v485_v62 }
 0x147   :  { %v444_v0 = vpop.f32.mrf.mxu2 }
 0x148   :  { %v457_v1 = vpop.f32.mrf.mxu3  ;;  %629 = vmatmul.bf16.vlgmr.msrb.gmra.mxu2 %v487_v63 }
 0x1c5   :  { %v643_v2 = vpop.f32.mrf.mxu3 }
 0x1cb   :  { %v630_v4 = vpop.f32.mrf.mxu2 }
 0x1cc   :  { %v631_v5 = vadd.f32 %v997_v3, %v630_v4 }
 0x1cd   :  { %v645_v6 = vpop.f32.mrf.mxu3 }
 0x1ce   :  { %v644_v7 = vadd.f32 %v643_v2, %v631_v5 }
 0x1d0   :  { %647 = vst [vmem:[#allocation11] sm:$0xff] %v644_v7 }
 0x1d1   :  { %658 = dma.vmem_to_hbm [thread:$0]  %s654_s29, 128, %s656_s9, [#allocation4]  }
 0x1d3   :  { %v632_v8 = vpop.f32.mrf.mxu2 }
 0x1d4   :  { %1148 = dma.done.wait [#allocation4], 128  }
 0x1d5   :  { %1149 = vsyncadd [#allocation4], 4294967168 }
 0x1d6   :  { %663 = vsyncpa [#allocation3], 1 }
 0x1d7   :  { %664 = vsyncpa [#allocation6], 1 }
 0x1d8   :  { %665 = vsyncpa [#allocation9], 1 }
 0x1d9   :  { %666 = vsyncpa [#allocation4], 1 }

</bundles_post_ra>
